<compile_context>
chip_gen: v7x
topology: tpu7x:2x2x1
jax: 0.10.0
libtpu: 0.0.40
codegen_flags: <defaults>
</compile_context>

<pallas_src>
import functools

import jax
import jax.numpy as jnp
from jax import lax
from jax.experimental import pallas as pl
from jax.experimental.pallas import tpu as pltpu

LEAK = 0.1     # Darknet default LeakyReLU negative slope
BN_EPS = 1e-5

_OFFSETS = tuple((dy, dx) for dy in (-1, 0, 1) for dx in (-1, 0, 1))


def _leaky(x):
    # max(x, 0.1*x) == LeakyReLU(0.1) for x in R; cheaper than where(x>0, ...).
    return jnp.maximum(x, LEAK * x)


def resblock_kernel(x_ref, w1_ref, b1_ref, w2_ref, b2_ref, mask_ref, out_ref,
                    *, H, W):
    # x_ref:    (1, C, HW)    one image, channels on sublanes, spatial on lanes
    # w1_ref:   (Cmid, C)     bf16, 1x1 conv weight with BN scale folded in
    # b1_ref:   (Cmid, 1)     f32 folded BN bias for conv1
    # w2_ref:   (C, 9*Cmid)   bf16, 3x3 conv weight (col = (ky*3+kx)*Cmid + cin),
    #                         BN scale folded in
    # b2_ref:   (C, 1)        f32 folded BN bias for conv2
    # mask_ref: (8, HW)       f32 border masks for the 8 non-center taps
    # out_ref:  (1, C, HW)
    HW = H * W

    x_f32 = x_ref[0].astype(jnp.float32)                     # residual (exact)

    # ---- conv1: 1x1 conv == channel matmul (bf16 operands, f32 accumulate) --
    y1 = jnp.dot(w1_ref[...], x_ref[0].astype(jnp.bfloat16),
                 preferred_element_type=jnp.float32)          # (Cmid, HW)
    y1 = _leaky(y1 + b1_ref[...])

    # ---- conv2: gather the 9 taps via lane rolls + precomputed masks --------
    taps = []
    mi = 0
    for (dy, dx) in _OFFSETS:
        d = dy * W + dx                        # flat-index shift of this tap
        t = pltpu.roll(y1, (-d) % HW, axis=1) if d != 0 else y1
        if (dy, dx) != (0, 0):
            # (1, HW) mask broadcast over sublanes: zeros the padding=1 border.
            t = t * mask_ref[pl.ds(mi, 1), :]
            mi += 1
        taps.append(t)
    # Single fused MXU matmul with contraction depth K = 9*Cmid (bf16 operand).
    stacked = jnp.concatenate(taps, axis=0).astype(jnp.bfloat16)  # (9*Cmid, HW)
    y2 = jnp.dot(w2_ref[...], stacked, preferred_element_type=jnp.float32)
    y2 = _leaky(y2 + b2_ref[...])

    # ---- residual add --------------------------------------------------------
    out_ref[0] = (y2 + x_f32).astype(out_ref.dtype)


def resblock_forward(x_ncs, w1_bf, b1, w2_bf, b2, masks, *, H, W):
    N, C, HW = x_ncs.shape
    Cmid = w1_bf.shape[0]
    assert HW == H * W
    assert HW % 128 == 0, "pad H*W to a multiple of 128 for lane-dense stores"

    bpe = x_ncs.dtype.itemsize
    # Rough resident-VMEM estimate: double-buffered image in/out, single-buffered
    # bf16 weights + masks, f32 intermediates (y1, 9 rolled taps, y2) + bf16 stack.
    est_vmem = (4 * C * HW * bpe
                + 2 * (w1_bf.size + w2_bf.size)
                + 4 * (b1.size + b2.size + masks.size)
                + 4 * Cmid * HW
                + (4 + 2) * 9 * Cmid * HW
                + 4 * C * HW)
    vmem_limit = int(min(64 * 2**20, max(32 * 2**20, 2 * est_vmem)))

    kernel = functools.partial(resblock_kernel, H=H, W=W)
    flops = 2 * N * HW * (C * Cmid + 9 * Cmid * C)
    bytes_accessed = (2 * x_ncs.size * bpe
                      + 2 * (w1_bf.size + w2_bf.size)
                      + 4 * (b1.size + b2.size + masks.size))

    const = dict(pipeline_mode=pl.Buffered(1))   # grid-invariant -> single buffer

    return pl.pallas_call(
        kernel,
        out_shape=jax.ShapeDtypeStruct((N, C, HW), x_ncs.dtype),
        grid_spec=pltpu.PrefetchScalarGridSpec(
            num_scalar_prefetch=0,
            grid=(N,),
            in_specs=[
                pl.BlockSpec((1, C, HW), lambda n: (n, 0, 0)),
                pl.BlockSpec((Cmid, C), lambda n: (0, 0), **const),
                pl.BlockSpec((Cmid, 1), lambda n: (0, 0), **const),
                pl.BlockSpec((C, 9 * Cmid), lambda n: (0, 0), **const),
                pl.BlockSpec((C, 1), lambda n: (0, 0), **const),
                pl.BlockSpec((8, HW), lambda n: (0, 0), **const),
            ],
            out_specs=pl.BlockSpec((1, C, HW), lambda n: (n, 0, 0)),
        ),
        compiler_params=pltpu.CompilerParams(
            dimension_semantics=("parallel",),
            vmem_limit_bytes=vmem_limit),
        cost_estimate=pl.CostEstimate(
            flops=flops, transcendentals=0, bytes_accessed=bytes_accessed),
    )(x_ncs, w1_bf, b1, w2_bf, b2, masks)


def fold_bn(gamma, beta, mean, var):
    scale = gamma / jnp.sqrt(var + BN_EPS)
    bias = beta - mean * scale
    return scale, bias


def build_tap_masks(H, W, dtype=jnp.float32):
    """(8, H*W) masks for the 8 non-center 3x3 taps (padding=1 zero border)."""
    idx = jnp.arange(H * W, dtype=jnp.int32)
    r, c = idx // W, idx % W
    masks = []
    for dy, dx in _OFFSETS:
        if dy == 0 and dx == 0:
            continue
        m = jnp.ones((H * W,), dtype=jnp.bool_)
        if dy == -1:
            m = m & (r >= 1)
        elif dy == 1:
            m = m & (r <= H - 2)
        if dx == -1:
            m = m & (c >= 1)
        elif dx == 1:
            m = m & (c <= W - 2)
        masks.append(m.astype(dtype))
    return jnp.stack(masks, axis=0)


def reference_nchw(x, w1, s1, b1, w2, s2, b2):
    dn = ("NCHW", "OIHW", "NCHW")
    y = lax.conv_general_dilated(x, w1, (1, 1), "VALID", dimension_numbers=dn,
                                 precision=lax.Precision.HIGHEST)
    y = _leaky(y * s1[None, :, None, None] + b1[None, :, None, None])
    y = lax.conv_general_dilated(y, w2, (1, 1), [(1, 1), (1, 1)],
                                 dimension_numbers=dn,
                                 precision=lax.Precision.HIGHEST)
    y = _leaky(y * s2[None, :, None, None] + b2[None, :, None, None])
    return y + x


if __name__ == "__main__":
    key = jax.random.PRNGKey(0)
    N, C, H, W = 2, 16, 16, 16        # in_channel = 16 -> mid channel = 8
    Cmid = C // 2

    keys = jax.random.split(key, 11)
    x_nchw = jax.random.normal(keys[0], (N, C, H, W), jnp.float32)

    # PyTorch weight layouts: conv1 (Cmid, C, 1, 1), conv2 (C, Cmid, 3, 3).
    w1_torch = 0.1 * jax.random.normal(keys[1], (Cmid, C, 1, 1), jnp.float32)
    w2_torch = 0.1 * jax.random.normal(keys[2], (C, Cmid, 3, 3), jnp.float32)

    # BatchNorm params (eval mode), folded into scale/bias.
    g1 = 1.0 + 0.1 * jax.random.normal(keys[3], (Cmid,), jnp.float32)
    be1 = 0.1 * jax.random.normal(keys[4], (Cmid,), jnp.float32)
    m1 = 0.1 * jax.random.normal(keys[5], (Cmid,), jnp.float32)
    v1 = jnp.abs(jax.random.normal(keys[6], (Cmid,), jnp.float32)) + 0.5
    g2 = 1.0 + 0.1 * jax.random.normal(keys[7], (C,), jnp.float32)
    be2 = 0.1 * jax.random.normal(keys[8], (C,), jnp.float32)
    m2 = 0.1 * jax.random.normal(keys[9], (C,), jnp.float32)
    v2 = jnp.abs(jax.random.normal(keys[10], (C,), jnp.float32)) + 0.5
    s1, b1 = fold_bn(g1, be1, m1, v1)
    s2, b2 = fold_bn(g2, be2, m2, v2)

    # Kernel-side layouts: channels on sublanes, spatial on lanes; BN scale
    # folded into the bf16 conv weights, only the bias stays separate.
    x_ncs = x_nchw.reshape(N, C, H * W)
    w1_mat = (s1[:, None] * w1_torch.reshape(Cmid, C)).astype(jnp.bfloat16)
    # (C, Cmid, 3, 3) -> (C, ky, kx, Cmid) -> (C, 9*Cmid): col = (ky*3+kx)*Cmid+ci
    w2_mat = (s2[:, None]
              * jnp.transpose(w2_torch, (0, 2, 3, 1)).reshape(C, 9 * Cmid)
              ).astype(jnp.bfloat16)
    b1_col, b2_col = b1.reshape(Cmid, 1), b2.reshape(C, 1)
    masks = build_tap_masks(H, W)

    out_ncs = resblock_forward(x_ncs, w1_mat, b1_col, w2_mat, b2_col, masks,
                               H=H, W=W)
    out_nchw = jax.block_until_ready(out_ncs).reshape(N, C, H, W)

    ref = reference_nchw(x_nchw, w1_torch, s1, b1, w2_torch, s2, b2)
    err = float(jnp.max(jnp.abs(out_nchw - ref)))
    assert jnp.allclose(out_nchw, ref, atol=3e-2, rtol=3e-2), err

    print("KERNEL_OK")
</pallas_src>

<mosaic_0001>
module attributes {stable_mosaic.version = 11 : i64} {
  func.func @resblock_kernel(%arg0: i32, %arg1: memref<1x16x256xf32, #tpu.memory_space<vmem>>, %arg2: memref<8x16xbf16, #tpu.memory_space<vmem>>, %arg3: memref<8x1xf32, #tpu.memory_space<vmem>>, %arg4: memref<16x72xbf16, #tpu.memory_space<vmem>>, %arg5: memref<16x1xf32, #tpu.memory_space<vmem>>, %arg6: memref<8x256xf32, #tpu.memory_space<vmem>>, %arg7: memref<1x16x256xf32, #tpu.memory_space<vmem>>) attributes {dimension_semantics = [#tpu.dimension_semantics<parallel>], iteration_bounds = array<i64: 2>, scalar_prefetch = 0 : i64, scratch_operands = 0 : i64, tpu.core_type = #tpu.core_type<tc>, window_params = [{transform_indices = @transform_0, window_bounds = array<i64: 1, 16, 256>}, {pipeline_mode = #tpu.pipeline_mode<synchronous>, transform_indices = @transform_1, window_bounds = array<i64: 8, 16>}, {pipeline_mode = #tpu.pipeline_mode<synchronous>, transform_indices = @transform_2, window_bounds = array<i64: 8, 1>}, {pipeline_mode = #tpu.pipeline_mode<synchronous>, transform_indices = @transform_3, window_bounds = array<i64: 16, 72>}, {pipeline_mode = #tpu.pipeline_mode<synchronous>, transform_indices = @transform_4, window_bounds = array<i64: 16, 1>}, {pipeline_mode = #tpu.pipeline_mode<synchronous>, transform_indices = @transform_5, window_bounds = array<i64: 8, 256>}, {transform_indices = @transform_6, window_bounds = array<i64: 1, 16, 256>}]} {
    %c0 = arith.constant 0 : index
    %c0_0 = arith.constant 0 : index
    %c0_1 = arith.constant 0 : index
    %0 = vector.load %arg1[%c0, %c0_0, %c0_1] : memref<1x16x256xf32, #tpu.memory_space<vmem>>, vector<1x16x256xf32>
    %1 = vector.shape_cast %0 : vector<1x16x256xf32> to vector<16x256xf32>
    %c0_2 = arith.constant 0 : index
    %c0_3 = arith.constant 0 : index
    %2 = vector.load %arg2[%c0_2, %c0_3] : memref<8x16xbf16, #tpu.memory_space<vmem>>, vector<8x16xbf16>
    %c0_4 = arith.constant 0 : index
    %c0_5 = arith.constant 0 : index
    %c0_6 = arith.constant 0 : index
    %3 = vector.load %arg1[%c0_4, %c0_5, %c0_6] : memref<1x16x256xf32, #tpu.memory_space<vmem>>, vector<1x16x256xf32>
    %4 = vector.shape_cast %3 : vector<1x16x256xf32> to vector<16x256xf32>
    %5 = arith.truncf %4 : vector<16x256xf32> to vector<16x256xbf16>
    %cst = arith.constant dense<0.000000e+00> : vector<8x256xf32>
    %6 = tpu.matmul %2, %5, %cst {dimension_numbers = #tpu.dot_dimension_numbers<[1], [0], [0], [1], [0, 0, 1, 1], [], []>} : vector<8x16xbf16>, vector<16x256xbf16>, vector<8x256xf32> -> vector<8x256xf32>
    %c0_7 = arith.constant 0 : index
    %c0_8 = arith.constant 0 : index
    %7 = vector.load %arg3[%c0_7, %c0_8] : memref<8x1xf32, #tpu.memory_space<vmem>>, vector<8x1xf32>
    %8 = vector.broadcast %7 : vector<8x1xf32> to vector<8x256xf32>
    %9 = arith.addf %6, %8 : vector<8x256xf32>
    %cst_9 = arith.constant 1.000000e-01 : f32
    %10 = vector.broadcast %cst_9 : f32 to vector<8x256xf32>
    %11 = arith.mulf %10, %9 : vector<8x256xf32>
    %12 = arith.maximumf %9, %11 : vector<8x256xf32>
    %c17_i32 = arith.constant 17 : i32
    %13 = tpu.dynamic_rotate %12 by %c17_i32 dim 1 : vector<8x256xf32>, i32 -> vector<8x256xf32>
    %c0_10 = arith.constant 0 : index
    %c0_11 = arith.constant 0 : index
    %14 = vector.load %arg6[%c0_10, %c0_11] : memref<8x256xf32, #tpu.memory_space<vmem>>, vector<1x256xf32>
    %15 = vector.broadcast %14 : vector<1x256xf32> to vector<8x256xf32>
    %16 = arith.mulf %13, %15 : vector<8x256xf32>
    %c16_i32 = arith.constant 16 : i32
    %17 = tpu.dynamic_rotate %12 by %c16_i32 dim 1 : vector<8x256xf32>, i32 -> vector<8x256xf32>
    %c1 = arith.constant 1 : index
    %c0_12 = arith.constant 0 : index
    %18 = vector.load %arg6[%c1, %c0_12] : memref<8x256xf32, #tpu.memory_space<vmem>>, vector<1x256xf32>
    %19 = vector.broadcast %18 : vector<1x256xf32> to vector<8x256xf32>
    %20 = arith.mulf %17, %19 : vector<8x256xf32>
    %c15_i32 = arith.constant 15 : i32
    %21 = tpu.dynamic_rotate %12 by %c15_i32 dim 1 : vector<8x256xf32>, i32 -> vector<8x256xf32>
    %c2 = arith.constant 2 : index
    %c0_13 = arith.constant 0 : index
    %22 = vector.load %arg6[%c2, %c0_13] : memref<8x256xf32, #tpu.memory_space<vmem>>, vector<1x256xf32>
    %23 = vector.broadcast %22 : vector<1x256xf32> to vector<8x256xf32>
    %24 = arith.mulf %21, %23 : vector<8x256xf32>
    %c1_i32 = arith.constant 1 : i32
    %25 = tpu.dynamic_rotate %12 by %c1_i32 dim 1 : vector<8x256xf32>, i32 -> vector<8x256xf32>
    %c3 = arith.constant 3 : index
    %c0_14 = arith.constant 0 : index
    %26 = vector.load %arg6[%c3, %c0_14] : memref<8x256xf32, #tpu.memory_space<vmem>>, vector<1x256xf32>
    %27 = vector.broadcast %26 : vector<1x256xf32> to vector<8x256xf32>
    %28 = arith.mulf %25, %27 : vector<8x256xf32>
    %c255_i32 = arith.constant 255 : i32
    %29 = tpu.dynamic_rotate %12 by %c255_i32 dim 1 : vector<8x256xf32>, i32 -> vector<8x256xf32>
    %c4 = arith.constant 4 : index
    %c0_15 = arith.constant 0 : index
    %30 = vector.load %arg6[%c4, %c0_15] : memref<8x256xf32, #tpu.memory_space<vmem>>, vector<1x256xf32>
    %31 = vector.broadcast %30 : vector<1x256xf32> to vector<8x256xf32>
    %32 = arith.mulf %29, %31 : vector<8x256xf32>
    %c241_i32 = arith.constant 241 : i32
    %33 = tpu.dynamic_rotate %12 by %c241_i32 dim 1 : vector<8x256xf32>, i32 -> vector<8x256xf32>
    %c5 = arith.constant 5 : index
    %c0_16 = arith.constant 0 : index
    %34 = vector.load %arg6[%c5, %c0_16] : memref<8x256xf32, #tpu.memory_space<vmem>>, vector<1x256xf32>
    %35 = vector.broadcast %34 : vector<1x256xf32> to vector<8x256xf32>
    %36 = arith.mulf %33, %35 : vector<8x256xf32>
    %c240_i32 = arith.constant 240 : i32
    %37 = tpu.dynamic_rotate %12 by %c240_i32 dim 1 : vector<8x256xf32>, i32 -> vector<8x256xf32>
    %c6 = arith.constant 6 : index
    %c0_17 = arith.constant 0 : index
    %38 = vector.load %arg6[%c6, %c0_17] : memref<8x256xf32, #tpu.memory_space<vmem>>, vector<1x256xf32>
    %39 = vector.broadcast %38 : vector<1x256xf32> to vector<8x256xf32>
    %40 = arith.mulf %37, %39 : vector<8x256xf32>
    %c239_i32 = arith.constant 239 : i32
    %41 = tpu.dynamic_rotate %12 by %c239_i32 dim 1 : vector<8x256xf32>, i32 -> vector<8x256xf32>
    %c7 = arith.constant 7 : index
    %c0_18 = arith.constant 0 : index
    %42 = vector.load %arg6[%c7, %c0_18] : memref<8x256xf32, #tpu.memory_space<vmem>>, vector<1x256xf32>
    %43 = vector.broadcast %42 : vector<1x256xf32> to vector<8x256xf32>
    %44 = arith.mulf %41, %43 : vector<8x256xf32>
    %45 = tpu.concatenate %16, %20, %24, %28, %12, %32, %36, %40, %44 in 0 : vector<8x256xf32>, vector<8x256xf32>, vector<8x256xf32>, vector<8x256xf32>, vector<8x256xf32>, vector<8x256xf32>, vector<8x256xf32>, vector<8x256xf32>, vector<8x256xf32> -> vector<72x256xf32>
    %46 = arith.truncf %45 : vector<72x256xf32> to vector<72x256xbf16>
    %c0_19 = arith.constant 0 : index
    %c0_20 = arith.constant 0 : index
    %47 = vector.load %arg4[%c0_19, %c0_20] : memref<16x72xbf16, #tpu.memory_space<vmem>>, vector<16x72xbf16>
    %cst_21 = arith.constant dense<0.000000e+00> : vector<16x256xf32>
    %48 = tpu.matmul %47, %46, %cst_21 {dimension_numbers = #tpu.dot_dimension_numbers<[1], [0], [0], [1], [0, 0, 1, 1], [], []>} : vector<16x72xbf16>, vector<72x256xbf16>, vector<16x256xf32> -> vector<16x256xf32>
    %c0_22 = arith.constant 0 : index
    %c0_23 = arith.constant 0 : index
    %49 = vector.load %arg5[%c0_22, %c0_23] : memref<16x1xf32, #tpu.memory_space<vmem>>, vector<16x1xf32>
    %50 = vector.broadcast %49 : vector<16x1xf32> to vector<16x256xf32>
    %51 = arith.addf %48, %50 : vector<16x256xf32>
    %cst_24 = arith.constant 1.000000e-01 : f32
    %52 = vector.broadcast %cst_24 : f32 to vector<16x256xf32>
    %53 = arith.mulf %52, %51 : vector<16x256xf32>
    %54 = arith.maximumf %51, %53 : vector<16x256xf32>
    %55 = arith.addf %54, %1 : vector<16x256xf32>
    %c0_25 = arith.constant 0 : index
    %c0_26 = arith.constant 0 : index
    %c0_27 = arith.constant 0 : index
    %56 = vector.load %arg7[%c0_25, %c0_26, %c0_27] : memref<1x16x256xf32, #tpu.memory_space<vmem>>, vector<1x16x256xf32>
    %57 = vector.shape_cast %56 : vector<1x16x256xf32> to vector<16x256xf32>
    %58 = vector.shape_cast %55 : vector<16x256xf32> to vector<1x16x256xf32>
    tpu.vector_store %arg7[%c0_25, %c0_26, %c0_27], %58 {strides = array<i32>} : memref<1x16x256xf32, #tpu.memory_space<vmem>>, vector<1x16x256xf32>,
    return
  }
  func.func @transform_0(%arg0: i32) -> (i32, i32, i32) {
    %c0_i32 = arith.constant 0 : i32
    %c0_i32_0 = arith.constant 0 : i32
    %c0_i32_1 = arith.constant 0 : i32
    return %arg0, %c0_i32, %c0_i32_0 : i32, i32, i32
  }
  func.func @transform_1(%arg0: i32) -> (i32, i32) {
    %c0_i32 = arith.constant 0 : i32
    %c0_i32_0 = arith.constant 0 : i32
    %c0_i32_1 = arith.constant 0 : i32
    return %c0_i32, %c0_i32_0 : i32, i32
  }
  func.func @transform_2(%arg0: i32) -> (i32, i32) {
    %c0_i32 = arith.constant 0 : i32
    %c0_i32_0 = arith.constant 0 : i32
    %c0_i32_1 = arith.constant 0 : i32
    return %c0_i32, %c0_i32_0 : i32, i32
  }
  func.func @transform_3(%arg0: i32) -> (i32, i32) {
    %c0_i32 = arith.constant 0 : i32
    %c0_i32_0 = arith.constant 0 : i32
    %c0_i32_1 = arith.constant 0 : i32
    return %c0_i32, %c0_i32_0 : i32, i32
  }
  func.func @transform_4(%arg0: i32) -> (i32, i32) {
    %c0_i32 = arith.constant 0 : i32
    %c0_i32_0 = arith.constant 0 : i32
    %c0_i32_1 = arith.constant 0 : i32
    return %c0_i32, %c0_i32_0 : i32, i32
  }
  func.func @transform_5(%arg0: i32) -> (i32, i32) {
    %c0_i32 = arith.constant 0 : i32
    %c0_i32_0 = arith.constant 0 : i32
    %c0_i32_1 = arith.constant 0 : i32
    return %c0_i32, %c0_i32_0 : i32, i32
  }
  func.func @transform_6(%arg0: i32) -> (i32, i32, i32) {
    %c0_i32 = arith.constant 0 : i32
    %c0_i32_0 = arith.constant 0 : i32
    %c0_i32_1 = arith.constant 0 : i32
    return %arg0, %c0_i32, %c0_i32_0 : i32, i32, i32
  }
}

</mosaic_0001>

<bundles_post_ra>
// kernel: tpu_custom_call.1
= control target key start
LH: loop header
LB: loop body
LE: loop exit
PB: predicated region body
PF: predicated region fallthrough
CT: control target
= control target key end

     0   :  { %11 = vsyncpa [#allocation3], 0  ;;  %s1227_s0 = inlined_call_operand.hbm [shape: f32[2,16,256], index: 0, kind: input, shape index: {}]   ;;  %s1228_s1 = inlined_call_operand.vmem [shape: bf16[8,16], index: 1, kind: input, shape index: {}]   ;;  %s1229_s2 = inlined_call_operand.vmem [shape: f32[8,1], index: 2, kind: input, shape index: {}]   ;;  %s1230_s3 = inlined_call_operand.vmem [shape: bf16[16,72], index: 3, kind: input, shape index: {}]   ;;  %s1231_s4 = inlined_call_operand.vmem [shape: f32[16,1], index: 4, kind: input, shape index: {}]   ;;  %s1232_s5 = inlined_call_operand.vmem [shape: f32[8,256], index: 5, kind: input, shape index: {}]   ;;  %s1233_s6 = inlined_call_operand.hbm [shape: f32[2,16,256], index: 6, kind: output, shape index: {}]  }
   0x1   :  { %13 = vsyncpa [#allocation3 + $0x1], 0 }
   0x2   :  { %14 = vsyncpa [#allocation4], 0 }
   0x3   :  { %16 = vsyncpa [#allocation4 + $0x1], 0  ;;  %s931_s21 = smov 0   ;;  %s933_s22 = smov 0  }
   0x4   :  { %s935_s23 = smov 0   ;;  %s937_s24 = smov 0  }
   0x5 LB: > { %s952_s25 = sadd.s32 4294967295, %s880_s24   ;;  %s696_s26 = sadd.s32 4294967294, %s880_s24   ;;  %s880_s24 = sphi %s937_s24, %s1246_s24   ;;  %s876_s23 = sphi %s935_s23, %s1245_s23   ;;  %s872_s22 = sphi %s933_s22, %s1244_s22   ;;  %s868_s21 = sphi %s931_s21, %s1243_s21  }
   0x6   : > { %s956_s27 = sadd.s32 1, %s880_s24   ;;  %s29_s28 = sadd.s32 1, %s876_s23 }
   0x7   : > { %s26_s29 = ssub.s32 %s880_s24, %s956_s27  ;;  %p36_p0 = scmp.ne.s32.totalorder %s876_s23, %s872_s22 }
   0x8   : > { %p27_p1 = scmp.eq.s32.totalorder %s26_s29, 0  ;;  %p37_p2 = scmp.eq.s32.totalorder %s880_s24, 0 }
   0x9   : > { %p42_p3 = scmp.ne.s32.totalorder %s872_s22, %s868_s21  ;;  %p43_p4 = scmp.eq.s32.totalorder %s952_s25, 0 }
   0xa   : > { %s968_s30 = scalar_select %p27_p1, %s876_s23, %s29_s28  }
   0xb   : > { %p970_p5 = por %p37_p2, %p36_p0  ;;  %p974_p6 = por %p43_p4, %p42_p3 }
   0xc   : > { %p171_p7 = scmp.eq.s32.totalorder %s952_s25, 1  ;;  %p177_p8 = scmp.eq.s32.totalorder %s696_s26, 1 }
   0xd   : > { %p735_p10 = scmp.lt.s32.totalorder %s880_s24, 2  ;;  %s212_s11 = sand.u32 1, %s876_s23  }
   0xe   : > { %p981_p11 = por %p171_p7, %p36_p0  ;;  %p985_p12 = por %p177_p8, %p42_p3 }
   0xf   : > { %s721_s12 = sshll.u32 %s880_s24, 9  ;;  %s699_s13 = sshll.u32 %s212_s11, 5 }
  0x10   : > { %s1237_s9 = scalar_select %p981_p11, 1, 0 }
  0x11   : > { %s1238_s10 = scalar_select %p985_p12, 1, 0 }
  0x12   : > { %s994_s16 = scalar_lea.hbm %s1227_s0, %s721_s12  ;;  %s216_s17 = scalar_lea.vmem [#allocation2], %s699_s13 }
  0x13   : > { %s223_s18 = sshll.u32 %s216_s17, 4  ;;  %p998_p13 = pnand %p735_p10, %p970_p5  ;;  %s1002_s18 = int_to_ptr.vmem [resolvable:$true] %s223_s18 }
  0x14   : > { %s1004_s20 = scalar_lea.sflag [#allocation3], %s212_s11  ;;  %s784_s26 = scalar_lea.hbm %s994_s16, 512 }
  0x15   : > { %p785_p0 = scmp.ne.s32.totalorder %s994_s16, %s784_s26  ;;  %p786_p1 = pneg %p998_p13 }
  0x16   : > { %s789_s7 = scalar_lea.hbm %s1227_s0, 1024  ;;  %p790_p4 = scmp.lt.u32.totalorder %s994_s16, %s1227_s0 }
  0x17   : > { %p787_p2 = pnand %p786_p1, %p785_p0  ;;  %p791_p5 = scmp.lt.u32.totalorder %s789_s7, %s784_s26 }
  0x18   : > { %p793_p8 = scmp.lt.u32.totalorder %s784_s26, %s994_s16 }
  0x19   : > { %p788_p3 = pneg %p787_p2  ;;  %p792_p7 = por %p791_p5, %p790_p4 }
  0x1b   : > { %p794_p10 = por %p793_p8, %p792_p7 }
  0x1d   : > { %p795_p9 = pnand %p794_p10, %p788_p3 }
  0x1f   : > { %798 = shalt.err (!%p795_p9)
}
  0x20   : > { %s799_s11 = scalar_lea.vmem %s1002_s18, 512  ;;  %s882_s14 = smov [#allocation2]  }
  0x21   : > { %p800_p0 = scmp.ne.s32.totalorder %s1002_s18, %s799_s11  ;;  %s804_s15 = sshll.u32 %s882_s14, 4  ;;  %s805_s15 = int_to_ptr.vmem [resolvable:$false] %s804_s15 }
  0x22   : > { %s806_s17 = scalar_lea.vmem %s805_s15, 1024  ;;  %p807_p11 = scmp.lt.s32.totalorder %s1002_s18, %s805_s15 }
  0x23   : > { %p802_p2 = pnand %p800_p0, %p786_p1  ;;  %p808_p4 = scmp.lt.s32.totalorder %s806_s17, %s799_s11 }
  0x25   : > { %p803_p12 = pneg %p802_p2  ;;  %p809_p5 = por %p808_p4, %p807_p11 }
  0x27   : > { %p810_p7 = pnand %p809_p5, %p803_p12 }
  0x29   : > { %813 = shalt.err (!%p810_p7)
}
  0x2a   : > { %s883_s26 = smov 256   ;;  %s884_s28 = smov 16  }
  0x2b   : > { %730 = dma.hbm_to_vmem [thread:$0]  (!%p998_p13), %s994_s16, 512, %s1002_s18, %s1004_s20, %s883_s26, %s883_s26, %s884_s28  }
  0x2c   : > { %p702_p9 = scmp.ge.s32.totalorder %s880_s24, 1  ;;  %p231_p1 = scmp.lt.s32.totalorder %s880_s24, 3 }
  0x2e   : > { %p232_p3 = pnand %p702_p9, %p231_p1 }
  0x2f   : > { %s1035_s29 = sand.u32 (!%p232_p3), 1, %s872_s22  }
  0x30   : > { %235 = sbr.rel (%p232_p3) target bundleno = 671 (0x29f), region = 44  ;;  %s703_s7 = sshll.u32 (!%p232_p3), %s1035_s29, 5 }
  0x31   : > { %s238_s12 = scalar_lea.sflag (!%p232_p3), [#allocation3], %s1035_s29  ;;  %s241_s13 = scalar_lea.vmem (!%p232_p3), [#allocation2], %s703_s7 }
  0x37   : > { %859 = dma.done.wait (%p974_p6), %s238_s12, 512  }
  0x38   : > { %861 = vsyncadd (%p974_p6), %s238_s12, 4294966784  ;;  %v885_v0 = vmov 0   ;;  %v1045_v1 = vld [vmem:[%s241_s13 + $0x8] sm:$0xff]  ;;  %v1047_v2 = vld [vmem:[%s241_s13 + $0x18] sm:$0xff]  ;;  %vm284_vm0 = vcmask 130048   ;;  %s886_s20 = smov 16   ;;  %v337_v22 = vlaneseq }
  0x39   : > { %320 = vmatprep.mubr.bf16.mxu0 %v885_v0  ;;  %781 = vset.pattern.permute.xlu0 %v885_v0  ;;  %v1049_v3 = vld [vmem:[%s241_s13] sm:$0xff]  ;;  %v277_v4 = vpack.c.bf16 %v1047_v2, %v1045_v1  ;;  %v1053_v5 = vld [vmem:[%s241_s13 + $0x10] sm:$0xff]  ;;  %s887_s11 = smov 17   ;;  %s888_s14 = smov 15   ;;  %v523_v20 = vld [vmem:[%s1231_s4 + $0x8] sm:$0xff]  ;;  %vm543_vm9 = vcmask 1043456  }
  0x3a   : > { %582 = vmatprep.mubr.bf16.mxu1 %v885_v0  ;;  %782 = vset.pattern.permute.xlu1 %v885_v0  ;;  %v278_v6 = vld [vmem:[%s1229_s2] sm:$0xff]  ;;  %v276_v7 = vpack.c.bf16 %v1053_v5, %v1049_v3  ;;  %s889_s15 = smov 1   ;;  %s890_s17 = smov 127   ;;  %v345_v25 = vshrl.u32 %v337_v22, 7  ;;  %v1091_v26 = vand.u32 127, %v337_v22  ;;  %vm539_vm10 = vcmask 588800  }
  0x3b   : > { %281 = vperm.xlu0 %781, %v278_v6   ;;  %288 = vmatprep.subr.bf16.mxu0 %v277_v4  ;;  %v275_v8 = vld [vmem:[%s1228_s1] sm:$0xf]  ;;  %s891_s26 = smov 113   ;;  %s892_s28 = smov 112  }
  0x3c   : > { %289 = vmatpush1.bf16.msra.mxu0 %v276_v7  ;;  %s893_s12 = smov 111   ;;  %v522_v21 = vld [vmem:[%s1231_s4] sm:$0xff]  ;;  %v1093_v28 = vsub.s32 0, %v345_v25  ;;  %v1095_v30 = vsub.s32 1, %v345_v25  ;;  %vm360_vm1 = vcmp.lt.s32.totalorder %v1091_v26, 16  ;;  %vm382_vm2 = vcmp.lt.s32.totalorder %v1091_v26, 15 }
  0x3d   : > { %v706_v31 = vld [vmem:[%s1232_s5 + $0x1] ss:$8 sm:$0x3]  ;;  %v342_v32 = vld [vmem:[%s1232_s5] ss:$8 sm:$0x3] }
  0x3e   : > { %v708_v33 = vld [vmem:[%s1232_s5 + $0x3] ss:$8 sm:$0x3]  ;;  %v369_v34 = vrot.slane %v706_v31, %v1093_v28  ;;  %v707_v36 = vld [vmem:[%s1232_s5 + $0x2] ss:$8 sm:$0x3]  ;;  %v373_v38 = vrot.slane %v706_v31, %v1095_v30  ;;  %v347_v42 = vrot.slane %v342_v32, %v1093_v28  ;;  %v351_v44 = vrot.slane %v342_v32, %v1095_v30 }
  0x3f   : > { %705 = vmatmul.mubr.msk.bf16.vlgmr.msra.gmra.mrb[0].mxu0 %vm284_vm0, %v275_v8  ;;  %vm339_vm3 = vcmp.lt.s32.totalorder %v1091_v26, 17  ;;  %v709_v41 = vld [vmem:[%s1232_s5 + $0x4] ss:$8 sm:$0x3]  ;;  %vm404_vm4 = vcmp.lt.s32.totalorder %v1091_v26, 1  ;;  %v417_v43 = vrot.slane %v708_v33, %v1095_v30  ;;  %v395_v45 = vrot.slane %v707_v36, %v1095_v30  ;;  %s722_s13 = sshll.u32 %s952_s25, 9 }
  0x40   : > { %v413_v46 = vrot.slane %v708_v33, %v1093_v28  ;;  %vm426_vm5 = vcmp.lt.s32.totalorder %v1091_v26, 127  ;;  %v439_v50 = vrot.slane %v709_v41, %v1095_v30  ;;  %v391_v60 = vrot.slane %v707_v36, %v1093_v28  ;;  %s1182_s18 = scalar_lea.hbm %s1233_s6, %s722_s13  ;;  %s610_s25 = scalar_lea.sflag [#allocation4], %s1035_s29 }
  0x41   : > { %v435_v8 = vrot.slane %v709_v41, %v1093_v28  ;;  %vm448_vm6 = vcmp.lt.s32.totalorder %v1091_v26, 113  ;;  %vm470_vm7 = vcmp.lt.s32.totalorder %v1091_v26, 112  ;;  %vm492_vm8 = vcmp.lt.s32.totalorder %v1091_v26, 111  ;;  %p1240_p11 = scmp.ne.s32.totalorder %s1237_s9, 0  ;;  %s894_s19 = smov [#allocation5]  }
  0xba   : > { %v282_v9 = vpop.permute.xlu0 %281 }
 0x112   : > { %v322_v10 = vpop.f32.mrb[0].mxu0 }
 0x113   : > { %v323_v11 = vadd.f32 %v322_v10, %v282_v9  ;;  %v324_v12 = vpop.f32.mrb[1].mxu0 }
 0x114   : > { %v325_v13 = vadd.f32 %v324_v12, %v282_v9  ;;  %v326_v14 = vpop.f32.mrb[2].mxu0 }
 0x115   : > { %v329_v15 = vmul.f32 0.1, %v323_v11  ;;  %v327_v16 = vpop.f32.mrb[3].mxu0 }
 0x116   : > { %v330_v18 = vmul.f32 0.1, %v325_v13 }
 0x117   : > { %v1063_v17 = vmax.f32 %v323_v11, %v329_v15  ;;  %v711_v15 = vld [vmem:[%s1232_s5 + $0x6] ss:$8 sm:$0x3] }
 0x118   : > { %v1068_v19 = vmax.f32 %v325_v13, %v330_v18  ;;  %v710_v13 = vld [vmem:[%s1232_s5 + $0x5] ss:$8 sm:$0x3] }
 0x119   : > { %356 = vrot.lane.b32.xlu1 %v1063_v17, %s886_s20  ;;  %333 = vrot.lane.b32.xlu0 %v1063_v17, %s887_s11  ;;  %v461_v22 = vrot.slane %v710_v13, %v1095_v30 }
 0x11d   : > { %378 = vrot.lane.b32.xlu1 %v1063_v17, %s888_s14  ;;  %358 = vrot.lane.b32.xlu0 %v1068_v19, %s886_s20 }
 0x121   : > { %400 = vrot.lane.b32.xlu1 %v1063_v17, %s889_s15  ;;  %380 = vrot.lane.b32.xlu0 %v1068_v19, %s888_s14 }
 0x125   : > { %335 = vrot.lane.b32.xlu1 %v1068_v19, %s887_s11  ;;  %402 = vrot.lane.b32.xlu0 %v1068_v19, %s889_s15  ;;  %s818_s11 = sshll.u32 %s894_s19, 4  ;;  %s819_s11 = int_to_ptr.vmem [resolvable:$false] %s818_s11 }
 0x126   : > { %s820_s14 = scalar_lea.vmem %s819_s11, 1024 }
 0x129   : > { %422 = vrot.lane.b32.xlu1 %v1063_v17, %s890_s17  ;;  %424 = vrot.lane.b32.xlu0 %v1068_v19, %s890_s17 }
 0x12d   : > { %444 = vrot.lane.b32.xlu1 %v1063_v17, %s891_s26  ;;  %446 = vrot.lane.b32.xlu0 %v1068_v19, %s891_s26 }
 0x131   : > { %466 = vrot.lane.b32.xlu1 %v1063_v17, %s892_s28  ;;  %468 = vrot.lane.b32.xlu0 %v1068_v19, %s892_s28  ;;  %s269_s28 = scalar_lea.vmem [#allocation5], %s703_s7 }
 0x135   : > { %488 = vrot.lane.b32.xlu1 %v1063_v17, %s893_s12  ;;  %490 = vrot.lane.b32.xlu0 %v1068_v19, %s893_s12  ;;  %s623_s12 = sshll.u32 %s269_s28, 4  ;;  %s1175_s12 = int_to_ptr.vmem [resolvable:$true] %s623_s12 }
 0x136   : > { %s814_s8 = scalar_lea.vmem %s1175_s12, 512  ;;  %p821_p8 = scmp.lt.s32.totalorder %s1175_s12, %s819_s11 }
 0x137   : > { %p815_p6 = scmp.ne.s32.totalorder %s1175_s12, %s814_s8  ;;  %p822_p10 = scmp.lt.s32.totalorder %s820_s14, %s814_s8 }
 0x139   : > { %531 = vperm.xlu0 %781, %v523_v20   ;;  %526 = vperm.xlu1 %782, %v522_v21   ;;  %v457_v21 = vrot.slane %v710_v13, %v1093_v28  ;;  %p816_p12 = pnand %p815_p6, %p1240_p11  ;;  %p823_p0 = por %p822_p10, %p821_p8 }
 0x13b   : > { %p817_p13 = pneg %p816_p12 }
 0x13d   : > { %p824_p2 = pnand %p823_p0, %p817_p13 }
 0x18b   : > { %v357_v23 = vpop.permute.xlu1 %356  ;;  %v334_v24 = vpop.permute.xlu0 %333 }
 0x18f   : > { %v379_v27 = vpop.permute.xlu1 %378  ;;  %v359_v29 = vpop.permute.xlu0 %358 }
 0x190   : > { %v361_v39 = vsel %vm360_vm1, %v357_v23, %v359_v29  ;;  %v362_v40 = vsel %vm360_vm1, %v359_v29, %v357_v23  ;;  %v483_v29 = vrot.slane %v711_v15, %v1095_v30 }
 0x191   : > { %v376_v47 = vmul.f32 %v369_v34, %v362_v40  ;;  %v377_v51 = vmul.f32 %v373_v38, %v361_v39 }
 0x193   : > { %v401_v35 = vpop.permute.xlu1 %400  ;;  %v381_v37 = vpop.permute.xlu0 %380 }
 0x194   : > { %v383_v52 = vsel %vm382_vm2, %v379_v27, %v381_v37  ;;  %v384_v61 = vsel %vm382_vm2, %v381_v37, %v379_v27  ;;  %v479_v27 = vrot.slane %v711_v15, %v1093_v28 }
 0x195   : > { %v399_v62 = vmul.f32 %v395_v45, %v383_v52  ;;  %v398_v14 = vmul.f32 %v391_v60, %v384_v61 }
 0x197   : > { %v336_v48 = vpop.permute.xlu1 %335  ;;  %v403_v49 = vpop.permute.xlu0 %402 }
 0x198   : > { %v340_v53 = vsel %vm339_vm3, %v334_v24, %v336_v48  ;;  %v341_v54 = vsel %vm339_vm3, %v336_v48, %v334_v24  ;;  %v405_v55 = vsel %vm404_vm4, %v401_v35, %v403_v49  ;;  %v406_v57 = vsel %vm404_vm4, %v403_v49, %v401_v35  ;;  %v712_v24 = vld [vmem:[%s1232_s5 + $0x7] ss:$8 sm:$0x3] }
 0x199   : > { %v354_v56 = vmul.f32 %v347_v42, %v341_v54  ;;  %v421_v58 = vmul.f32 %v417_v43, %v405_v55  ;;  %v355_v59 = vmul.f32 %v351_v44, %v340_v53  ;;  %v420_v7 = vmul.f32 %v413_v46, %v406_v57 }
 0x19a   : > { %v501_v35 = vrot.slane %v712_v24, %v1093_v28  ;;  %v505_v38 = vrot.slane %v712_v24, %v1095_v30 }
 0x19b   : > { %v423_v63 = vpop.permute.xlu1 %422  ;;  %v425_v0 = vpop.permute.xlu0 %424  ;;  %v511_v4 = vpack.c.bf16 %v377_v51, %v355_v59  ;;  %v510_v6 = vpack.c.bf16 %v376_v47, %v354_v56  ;;  %v513_v12 = vpack.c.bf16 %v421_v58, %v399_v62  ;;  %v512_v23 = vpack.c.bf16 %v420_v7, %v398_v14  ;;  %v783_v51 = vld [vmem:[%s1230_s3] sm:$0xff]  }
 0x19c   : > { %v428_v9 = vsel %vm426_vm5, %v425_v0, %v423_v63  ;;  %v427_v10 = vsel %vm426_vm5, %v423_v63, %v425_v0 }
 0x19d   : > { %v443_v11 = vmul.f32 %v439_v50, %v428_v9  ;;  %550 = vmatprep.subr.bf16.mxu1 %v511_v4  ;;  %v442_v20 = vmul.f32 %v435_v8, %v427_v10 }
 0x19e   : > { %551 = vmatpush1.bf16.msra.mxu1 %v510_v6 }
 0x19f   : > { %v445_v16 = vpop.permute.xlu1 %444  ;;  %552 = vmatprep.subr.bf16.mxu1 %v513_v12  ;;  %v447_v18 = vpop.permute.xlu0 %446  ;;  %v515_v25 = vpack.c.bf16 %v443_v11, %v1068_v19  ;;  %v514_v19 = vpack.c.bf16 %v442_v20, %v1063_v17 }
 0x1a0   : > { %v449_v31 = vsel %vm448_vm6, %v445_v16, %v447_v18  ;;  %v450_v32 = vsel %vm448_vm6, %v447_v18, %v445_v16 }
 0x1a1   : > { %v464_v39 = vmul.f32 %v457_v21, %v449_v31  ;;  %v465_v40 = vmul.f32 %v461_v22, %v450_v32 }
 0x1a2   : > { %553 = vmatpush1.bf16.msra.mxu1 %v512_v23 }
 0x1a3   : > { %v467_v33 = vpop.permute.xlu1 %466  ;;  %554 = vmatprep.subr.bf16.mxu1 %v515_v25  ;;  %v469_v34 = vpop.permute.xlu0 %468 }
 0x1a4   : > { %v471_v36 = vsel %vm470_vm7, %v467_v33, %v469_v34  ;;  %v472_v37 = vsel %vm470_vm7, %v469_v34, %v467_v33 }
 0x1a5   : > { %v486_v41 = vmul.f32 %v479_v27, %v471_v36  ;;  %v487_v42 = vmul.f32 %v483_v29, %v472_v37 }
 0x1a6   : > { %555 = vmatpush1.bf16.msra.mxu1 %v514_v19 }
 0x1a7   : > { %v489_v43 = vpop.permute.xlu1 %488  ;;  %v491_v44 = vpop.permute.xlu0 %490  ;;  %v517_v45 = vpack.c.bf16 %v487_v42, %v465_v40  ;;  %v516_v46 = vpack.c.bf16 %v486_v41, %v464_v39 }
 0x1a8   : > { %v493_v47 = vsel %vm492_vm8, %v489_v43, %v491_v44  ;;  %v494_v28 = vsel %vm492_vm8, %v491_v44, %v489_v43 }
 0x1a9   : > { %v508_v48 = vmul.f32 %v501_v35, %v493_v47  ;;  %v509_v49 = vmul.f32 %v505_v38, %v494_v28  ;;  %556 = vmatprep.subr.bf16.mxu1 %v517_v45 }
 0x1aa   : > { %557 = vmatpush1.bf16.msra.mxu1 %v516_v46 }
 0x1ab   : > { %v518_v17 = vpack.c.bf16 %v508_v48, %v508_v48  ;;  %v519_v30 = vpack.c.bf16 %v509_v49, %v509_v49 }
 0x1ad   : > { %714 = vmatprep.subr.msk.bf16.mxu1 %vm543_vm9, %v519_v30  ;;  %v545_v50 = vsel %vm543_vm9, %v518_v17, 0 }
 0x1ae   : > { %559 = vmatpush1.bf16.msra.mxu1 %v545_v50 }
 0x1b1   : > { %715 = vmatmul.mubr.msk.bf16.vlgmr.msra.gmra.mrb[0].mxu1 %vm539_vm10, %v783_v51 }
 0x1b8   : > { %v527_v52 = vpop.permute.xlu1 %526  ;;  %v532_v55 = vpop.permute.xlu0 %531 }
 0x284   : > { %v584_v26 = vpop.f32.mrb[0].mxu1 }
 0x285   : > { %v585_v53 = vadd.f32 %v584_v26, %v527_v52  ;;  %v586_v54 = vpop.f32.mrb[1].mxu1 }
 0x286   : > { %v587_v56 = vadd.f32 %v586_v54, %v527_v52  ;;  %v588_v57 = vpop.f32.mrb[2].mxu1 }
 0x287   : > { %v593_v58 = vmul.f32 0.1, %v585_v53  ;;  %v589_v59 = vadd.f32 %v588_v57, %v532_v55  ;;  %v590_v60 = vpop.f32.mrb[3].mxu1 }
 0x288   : > { %v594_v61 = vmul.f32 0.1, %v587_v56  ;;  %v591_v62 = vadd.f32 %v590_v60, %v532_v55 }
 0x289   : > { %v597_v63 = vmax.f32 %v585_v53, %v593_v58  ;;  %v595_v0 = vmul.f32 0.1, %v589_v59 }
 0x28a   : > { %v598_v4 = vmax.f32 %v587_v56, %v594_v61  ;;  %v596_v6 = vmul.f32 0.1, %v591_v62 }
 0x28b   : > { %v601_v7 = vadd.f32 %v597_v63, %v1049_v3  ;;  %v599_v8 = vmax.f32 %v589_v59, %v595_v0 }
 0x28c   : > { %v602_v9 = vadd.f32 %v598_v4, %v1045_v1  ;;  %v600_v10 = vmax.f32 %v591_v62, %v596_v6 }
 0x28d   : > { %605 = vst [vmem:[%s269_s28] sm:$0xff] %v601_v7  ;;  %v603_v11 = vadd.f32 %v599_v8, %v1053_v5 }
 0x28e   : > { %606 = vst [vmem:[%s269_s28 + $0x8] sm:$0xff] %v602_v9  ;;  %v604_v12 = vadd.f32 %v600_v10, %v1047_v2 }
 0x28f   : > { %607 = vst [vmem:[%s269_s28 + $0x10] sm:$0xff] %v603_v11 }
 0x290   : > { %608 = vst [vmem:[%s269_s28 + $0x18] sm:$0xff] %v604_v12 }
 0x291   : > { %827 = shalt.err (!%p824_p2)
}
 0x292   : > { %s828_s15 = scalar_lea.hbm %s1182_s18, 512  ;;  %s832_s28 = scalar_lea.hbm %s1233_s6, 1024 }
 0x293   : > { %p829_p4 = scmp.ne.s32.totalorder %s1182_s18, %s828_s15  ;;  %p833_p9 = scmp.lt.u32.totalorder %s1182_s18, %s1233_s6 }
 0x294   : > { %p834_p1 = scmp.lt.u32.totalorder %s832_s28, %s828_s15  ;;  %p836_p6 = scmp.lt.u32.totalorder %s828_s15, %s1182_s18 }
 0x295   : > { %p830_p5 = pnand %p829_p4, %p1240_p11 }
 0x296   : > { %p835_p3 = por %p834_p1, %p833_p9 }
 0x297   : > { %p831_p7 = pneg %p830_p5 }
 0x298   : > { %p837_p12 = por %p836_p6, %p835_p3 }
 0x29a   : > { %p838_p13 = pnand %p837_p12, %p831_p7 }
 0x29c   : > { %841 = shalt.err (!%p838_p13)
}
 0x29d   : > { %s895_s16 = smov 256  }
 0x29e   : > { %725 = dma.vmem_to_hbm [thread:$0]  (%p1240_p11), %s1175_s12, 512, %s1182_s18, %s610_s25, %s895_s16, %s895_s16, %s886_s20  }
 0x29f PF: > { %s638_s8 = sand.u32 1, %s868_s21   ;;  %p1241_p8 = scmp.ne.s32.totalorder %s1238_s10, 0 }
 0x2a0   : > { %p1242_p10 = scmp.ge.s32.totalorder %s880_s24, 2  ;;  %s639_s19 = scalar_lea.sflag [#allocation4], %s638_s8 }
 0x2a2   : > { %p732_p0 = pnand %p1242_p10, %p1241_p8 }
 0x2a4   : > { %863 = dma.done.wait (!%p732_p0), %s639_s19, 512  }
 0x2a5   : > { %865 = vsyncadd (!%p732_p0), %s639_s19, 4294966784  ;;  %p19_p2 = scmp.ge.s32.totalorder %s956_s27, 4   ;;  %s1243_s21 = smov %s872_s22 }
 0x2a6   : > { %s1244_s22 = smov %s876_s23  ;;  %s1245_s23 = smov %s968_s30 }
 0x2a7   : > { %s1246_s24 = smov %s956_s27  ;;  %21 = sbr.rel (!%p19_p2) target bundleno = 5 (0x5), region = 96 }
 0x2ae   :  { %644 = vsyncpa [#allocation3], 1 }
 0x2af   :  { %646 = vsyncpa [#allocation3 + $0x1], 1 }
 0x2b0   :  { %647 = vsyncpa [#allocation4], 1 }
 0x2b1   :  { %649 = vsyncpa [#allocation4 + $0x1], 1 }

</bundles_post_ra>
